<compile_context>
chip_gen: v6e
topology: v6e:2x2x1
jax: 0.10.0
libtpu: 0.0.40
codegen_flags: <defaults>
</compile_context>

<pallas_src>
import jax
import jax.numpy as jnp
from jax import lax
from jax.experimental import pallas as pl
from jax.experimental.pallas import tpu as pltpu

MARGIN = 0.2          # PairwizeDiffLoss(margin=0.2, norm="l1")
W_PAIR = 0.7
W_MSE = 0.3

_ROW_TILE = 256       # rows of the pairwise grid processed per grid step


def _combined_loss_kernel(xy_row_ref, xy_col_ref, out_ref, pair_acc, mse_acc):
    i = pl.program_id(0)
    nsteps = pl.num_programs(0)

    xy_row = xy_row_ref[...].astype(jnp.float32)        # (2, B)   resident
    d_row = xy_row[0:1, :] - xy_row[1:2, :]             # (1, B)   input - target
    b = d_row.shape[1]

    @pl.when(i == 0)
    def _init():
        pair_acc[...] = jnp.zeros_like(pair_acc)
        # MSE numerator uses the full resident row; compute it once.
        mse_acc[...] = jnp.sum(d_row * d_row, axis=-1, keepdims=True)    # (1, 1)

    xy_col = xy_col_ref[...].astype(jnp.float32)        # (TM, 2)  streamed tile
    d_col = xy_col[:, 0:1] - xy_col[:, 1:2]             # (TM, 1)
    tm = d_col.shape[0]

    # PairwizeDiffLoss, norm="l1":
    #   s - t = (input_i - input_j) - (target_i - target_j) = d_i - d_j
    dd = d_col - d_row                                  # (TM, B) broadcast
    hinge = jnp.maximum(jnp.abs(dd) - MARGIN, 0.0)
    row_sums = jnp.sum(hinge, axis=-1, keepdims=True)   # (TM, 1) lane reduce first

    # Mask rows of a padded edge tile (garbage-safe: where() ignores NaN/inf
    # in the unselected branch).
    row_ids = i * tm + lax.broadcasted_iota(jnp.int32, (tm, 1), 0)
    row_sums = jnp.where(row_ids < b, row_sums, 0.0)

    pair_acc[...] += jnp.sum(row_sums, axis=0, keepdims=True)            # (1, 1)

    @pl.when(i == nsteps - 1)
    def _finalize():
        inv_b = 1.0 / b                                  # compile-time constants
        out_ref[:, 0:1] = pair_acc[...] * (inv_b * inv_b)
        out_ref[:, 1:2] = mse_acc[...] * inv_b


def combined_loss(input_: jax.Array, target: jax.Array, *, row_tile: int = _ROW_TILE):
    """Returns [(weight, loss_value), ...] exactly like CombinedLoss.forward."""
    assert input_.shape == target.shape and input_.ndim == 1
    b = input_.shape[0]
    tm = b if b <= row_tile else row_tile
    nsteps = pl.cdiv(b, tm)

    # Two consolidated inputs in the caller's dtype (kernel upcasts to f32).
    xy_row = jnp.stack([input_, target], axis=0)        # (2, B)
    xy_col = jnp.stack([input_, target], axis=1)        # (B, 2)

    out = pl.pallas_call(
        _combined_loss_kernel,
        out_shape=jax.ShapeDtypeStruct((1, 2), jnp.float32),
        grid_spec=pltpu.PrefetchScalarGridSpec(
            num_scalar_prefetch=0,
            grid=(nsteps,),
            in_specs=[
                pl.BlockSpec((2, b), lambda i: (0, 0)),   # resident row view
                pl.BlockSpec((tm, 2), lambda i: (i, 0)),  # streamed row tile
            ],
            out_specs=pl.BlockSpec((1, 2), lambda i: (0, 0)),
            scratch_shapes=[
                pltpu.VMEM((1, 1), jnp.float32),          # pairwise-loss accumulator
                pltpu.VMEM((1, 1), jnp.float32),          # mse accumulator
            ],
        ),
        compiler_params=pltpu.CompilerParams(
            dimension_semantics=("arbitrary",),           # reduction over row tiles
            vmem_limit_bytes=48 * 1024 * 1024,
        ),
    )(xy_row, xy_col)

    return [(W_PAIR, out[0, 0]), (W_MSE, out[0, 1])]


def _reference(input_, target):
    d = (input_ - target).astype(jnp.float32)
    mse = jnp.mean(d * d)
    dd = d[:, None] - d[None, :]
    pair = jnp.mean(jnp.maximum(jnp.abs(dd) - MARGIN, 0.0))
    return [(W_PAIR, pair), (W_MSE, mse)]


if __name__ == "__main__":
    key = jax.random.PRNGKey(0)

    def check(b, k):
        k1, k2 = jax.random.split(k)
        # MOS-like scores in [1, 5]
        inp = jax.random.uniform(k1, (b,), jnp.float32, minval=1.0, maxval=5.0)
        tgt = jax.random.uniform(k2, (b,), jnp.float32, minval=1.0, maxval=5.0)
        out = combined_loss(inp, tgt)
        jax.block_until_ready([v for _, v in out])
        ref = _reference(inp, tgt)
        for (w, v), (wr, vr) in zip(out, ref):
            assert w == wr
            assert jnp.allclose(v, vr, atol=1e-5, rtol=1e-4), (b, w, v, vr)

    keys = jax.random.split(key, 3)
    check(8, keys[0])     # tiny B: single grid step, launch-overhead regime
    check(100, keys[1])   # B not a multiple of 128: lane-padding mask check
    check(500, keys[2])   # multi-step row-tiled grid with masked edge tile

    print("KERNEL_OK")
</pallas_src>

<mosaic_0001>
module attributes {stable_mosaic.version = 11 : i64} {
  func.func @_combined_loss_kernel(%arg0: i32, %arg1: memref<2x8xf32, #tpu.memory_space<vmem>>, %arg2: memref<8x2xf32, #tpu.memory_space<vmem>>, %arg3: memref<1x2xf32, #tpu.memory_space<vmem>>, %arg4: memref<1x1xf32, #tpu.memory_space<vmem>>, %arg5: memref<1x1xf32, #tpu.memory_space<vmem>>) attributes {dimension_semantics = [#tpu.dimension_semantics<arbitrary>], iteration_bounds = array<i64: 1>, scalar_prefetch = 0 : i64, scratch_operands = 2 : i64, tpu.core_type = #tpu.core_type<tc>, window_params = [{pipeline_mode = #tpu.pipeline_mode<synchronous>, transform_indices = @transform_0, window_bounds = array<i64: 2, 8>}, {transform_indices = @transform_1, window_bounds = array<i64: 8, 2>}, {pipeline_mode = #tpu.pipeline_mode<synchronous>, transform_indices = @transform_2, window_bounds = array<i64: 1, 2>}]} {
    %c0 = arith.constant 0 : index
    %c0_0 = arith.constant 0 : index
    %0 = vector.load %arg1[%c0, %c0_0] : memref<2x8xf32, #tpu.memory_space<vmem>>, vector<2x8xf32>
    %1 = vector.extract_strided_slice %0 {offsets = [0, 0], sizes = [1, 8], strides = [1, 1]} : vector<2x8xf32> to vector<1x8xf32>
    %2 = vector.extract_strided_slice %0 {offsets = [1, 0], sizes = [1, 8], strides = [1, 1]} : vector<2x8xf32> to vector<1x8xf32>
    %3 = arith.subf %1, %2 : vector<1x8xf32>
    %c0_i32 = arith.constant 0 : i32
    %4 = arith.cmpi eq, %arg0, %c0_i32 : i32
    %5 = arith.extui %4 : i1 to i32
    %c0_i32_1 = arith.constant 0 : i32
    %6 = arith.cmpi ne, %5, %c0_i32_1 : i32
    scf.if %6 {
      %cst_15 = arith.constant 0.000000e+00 : f32
      %37 = vector.broadcast %cst_15 : f32 to vector<1x1xf32>
      %c0_16 = arith.constant 0 : index
      %c0_17 = arith.constant 0 : index
      %38 = vector.load %arg4[%c0_16, %c0_17] : memref<1x1xf32, #tpu.memory_space<vmem>>, vector<1x1xf32>
      tpu.vector_store %arg4[%c0_16, %c0_17], %37 {strides = array<i32>} : memref<1x1xf32, #tpu.memory_space<vmem>>, vector<1x1xf32>,
      %39 = arith.mulf %3, %3 : vector<1x8xf32>
      %cst_18 = arith.constant dense<0.000000e+00> : vector<1xf32>
      %40 = vector.multi_reduction <add>, %39, %cst_18 [1] : vector<1x8xf32> to vector<1xf32>
      %41 = vector.shape_cast %40 : vector<1xf32> to vector<1x1xf32>
      %c0_19 = arith.constant 0 : index
      %c0_20 = arith.constant 0 : index
      %42 = vector.load %arg5[%c0_19, %c0_20] : memref<1x1xf32, #tpu.memory_space<vmem>>, vector<1x1xf32>
      tpu.vector_store %arg5[%c0_19, %c0_20], %41 {strides = array<i32>} : memref<1x1xf32, #tpu.memory_space<vmem>>, vector<1x1xf32>,
    } else {
    }
    %c0_2 = arith.constant 0 : index
    %c0_3 = arith.constant 0 : index
    %7 = vector.load %arg2[%c0_2, %c0_3] : memref<8x2xf32, #tpu.memory_space<vmem>>, vector<8x2xf32>
    %8 = vector.extract_strided_slice %7 {offsets = [0, 0], sizes = [8, 1], strides = [1, 1]} : vector<8x2xf32> to vector<8x1xf32>
    %9 = vector.extract_strided_slice %7 {offsets = [0, 1], sizes = [8, 1], strides = [1, 1]} : vector<8x2xf32> to vector<8x1xf32>
    %10 = arith.subf %8, %9 : vector<8x1xf32>
    %11 = vector.broadcast %10 : vector<8x1xf32> to vector<8x8xf32>
    %12 = vector.broadcast %3 : vector<1x8xf32> to vector<8x8xf32>
    %13 = arith.subf %11, %12 : vector<8x8xf32>
    %14 = math.absf %13 : vector<8x8xf32>
    %cst = arith.constant 2.000000e-01 : f32
    %15 = vector.broadcast %cst : f32 to vector<8x8xf32>
    %16 = arith.subf %14, %15 : vector<8x8xf32>
    %cst_4 = arith.constant 0.000000e+00 : f32
    %17 = vector.broadcast %cst_4 : f32 to vector<8x8xf32>
    %18 = arith.maximumf %16, %17 : vector<8x8xf32>
    %cst_5 = arith.constant dense<0.000000e+00> : vector<8xf32>
    %19 = vector.multi_reduction <add>, %18, %cst_5 [1] : vector<8x8xf32> to vector<8xf32>
    %20 = vector.shape_cast %19 : vector<8xf32> to vector<8x1xf32>
    %c8_i32 = arith.constant 8 : i32
    %21 = arith.muli %arg0, %c8_i32 : i32
    %22 = tpu.iota {dimensions = array<i32: 0>} : vector<8x1xi32>
    %23 = vector.broadcast %21 : i32 to vector<8x1xi32>
    %24 = arith.addi %23, %22 : vector<8x1xi32>
    %c8_i32_6 = arith.constant 8 : i32
    %25 = vector.broadcast %c8_i32_6 : i32 to vector<8x1xi32>
    %26 = arith.cmpi slt, %24, %25 : vector<8x1xi32>
    %cst_7 = arith.constant 0.000000e+00 : f32
    %27 = vector.broadcast %cst_7 : f32 to vector<8x1xf32>
    %28 = arith.select %26, %20, %27 : vector<8x1xi1>, vector<8x1xf32>
    %c0_8 = arith.constant 0 : index
    %c0_9 = arith.constant 0 : index
    %29 = vector.load %arg4[%c0_8, %c0_9] : memref<1x1xf32, #tpu.memory_space<vmem>>, vector<1x1xf32>
    %cst_10 = arith.constant dense<0.000000e+00> : vector<1xf32>
    %30 = vector.multi_reduction <add>, %28, %cst_10 [0] : vector<8x1xf32> to vector<1xf32>
    %31 = vector.shape_cast %30 : vector<1xf32> to vector<1x1xf32>
    %32 = arith.addf %29, %31 : vector<1x1xf32>
    %c0_11 = arith.constant 0 : index
    %c0_12 = arith.constant 0 : index
    %33 = vector.load %arg4[%c0_11, %c0_12] : memref<1x1xf32, #tpu.memory_space<vmem>>, vector<1x1xf32>
    tpu.vector_store %arg4[%c0_11, %c0_12], %32 {strides = array<i32>} : memref<1x1xf32, #tpu.memory_space<vmem>>, vector<1x1xf32>,
    %c0_i32_13 = arith.constant 0 : i32
    %34 = arith.cmpi eq, %arg0, %c0_i32_13 : i32
    %35 = arith.extui %34 : i1 to i32
    %c0_i32_14 = arith.constant 0 : i32
    %36 = arith.cmpi ne, %35, %c0_i32_14 : i32
    scf.if %36 {
      %c0_15 = arith.constant 0 : index
      %c0_16 = arith.constant 0 : index
      %37 = vector.load %arg4[%c0_15, %c0_16] : memref<1x1xf32, #tpu.memory_space<vmem>>, vector<1x1xf32>
      %cst_17 = arith.constant 1.562500e-02 : f32
      %38 = vector.broadcast %cst_17 : f32 to vector<1x1xf32>
      %39 = arith.mulf %37, %38 : vector<1x1xf32>
      %c0_18 = arith.constant 0 : index
      %c0_19 = arith.constant 0 : index
      %40 = vector.load %arg3[%c0_18, %c0_19] : memref<1x2xf32, #tpu.memory_space<vmem>>, vector<1x1xf32>
      tpu.vector_store %arg3[%c0_18, %c0_19], %39 {strides = array<i32>} : memref<1x2xf32, #tpu.memory_space<vmem>>, vector<1x1xf32>,
      %c0_20 = arith.constant 0 : index
      %c0_21 = arith.constant 0 : index
      %41 = vector.load %arg5[%c0_20, %c0_21] : memref<1x1xf32, #tpu.memory_space<vmem>>, vector<1x1xf32>
      %cst_22 = arith.constant 1.250000e-01 : f32
      %42 = vector.broadcast %cst_22 : f32 to vector<1x1xf32>
      %43 = arith.mulf %41, %42 : vector<1x1xf32>
      %c0_23 = arith.constant 0 : index
      %c1 = arith.constant 1 : index
      %44 = vector.load %arg3[%c0_23, %c1] : memref<1x2xf32, #tpu.memory_space<vmem>>, vector<1x1xf32>
      tpu.vector_store %arg3[%c0_23, %c1], %43 {strides = array<i32>} : memref<1x2xf32, #tpu.memory_space<vmem>>, vector<1x1xf32>,
    } else {
    }
    return
  }
  func.func @transform_0(%arg0: i32) -> (i32, i32) {
    %c0_i32 = arith.constant 0 : i32
    %c0_i32_0 = arith.constant 0 : i32
    %c0_i32_1 = arith.constant 0 : i32
    return %c0_i32, %c0_i32_0 : i32, i32
  }
  func.func @transform_1(%arg0: i32) -> (i32, i32) {
    %c0_i32 = arith.constant 0 : i32
    %c0_i32_0 = arith.constant 0 : i32
    return %arg0, %c0_i32 : i32, i32
  }
  func.func @transform_2(%arg0: i32) -> (i32, i32) {
    %c0_i32 = arith.constant 0 : i32
    %c0_i32_0 = arith.constant 0 : i32
    %c0_i32_1 = arith.constant 0 : i32
    return %c0_i32, %c0_i32_0 : i32, i32
  }
}

</mosaic_0001>

<bundles_post_ra>
// kernel: tpu_custom_call.1
= control target key start
LH: loop header
LB: loop body
LE: loop exit
PB: predicated region body
PF: predicated region fallthrough
CT: control target
= control target key end

     0   :  { %s130_s13 = smov 127   ;;  %s163_s0 = inlined_call_operand.vmem [shape: f32[2,8], index: 0, kind: input, shape index: {}]   ;;  %s164_s1 = inlined_call_operand.vmem [shape: f32[8,2], index: 1, kind: input, shape index: {}]   ;;  %s165_s2 = inlined_call_operand.hbm [shape: f32[1,2], index: 2, kind: output, shape index: {}]  }
   0x1   :  { %v29_v0 = vld [vmem:[%s164_s1] sm:$0xff] }
   0x2   :  { %v12_v1 = vld [vmem:[%s163_s0] sm:$0x3]  ;;  %31 = vrot.lane.b32.xlu0 %v29_v0, %s130_s13 }
   0x3   :  { %v14_v2 = vrot.slane %v12_v1, 1 }
   0x4   :  { %7 = vsyncpa [#allocation5], 0  ;;  %v131_v3 = vmov 0   ;;  %vm24_vm0 = vcmask 57344   ;;  %vm21_vm1 = vcmask 0   ;;  %v132_v9 = vmov 0.0  }
   0x5   :  { %107 = vset.pattern.permute.xlu0 %v131_v3  ;;  %v16_v4 = vsub.f32 %v12_v1, %v14_v2  ;;  %22 = vst.msk [vmem:[#allocation2] sm:$0x1] %vm21_vm1, %v132_v9  ;;  %v40_v11 = vlaneseq  ;;  %vm48_vm2 = vcmask 64512   ;;  %s133_s0 = smov 1   ;;  %s134_s1 = smov [#allocation4]   ;;  %vm85_vm3 = vcmask 8200  }
   0x6   :  { %s93_s14 = sshll.u32 %s134_s1, 4  ;;  %s94_s14 = int_to_ptr.vmem [resolvable:$true] %s93_s14 }
   0x7   :  { %v23_v5 = vmul.f32 %v16_v4, %v16_v4  ;;  %v41_v12 = vshrl.u32 %v40_v11, 7  ;;  %s108_s15 = scalar_lea.vmem %s94_s14, 16  ;;  %s112_s16 = scalar_lea.vmem %s94_s14, 32 }
   0x8   :  { %p109_p0 = scmp.ne.s32.totalorder %s94_s14, %s108_s15  ;;  %p113_p1 = scmp.lt.s32.totalorder %s94_s14, %s94_s14 }
   0x9   :  { %v25_v6 = vsel %vm24_vm0, %v23_v5, 0.0  ;;  %v42_v13 = vsub.s32 0, %v41_v12  ;;  %p114_p2 = scmp.lt.s32.totalorder %s112_s16, %s108_s15 }
   0xa   :  { %26 = vadd.xlane.f32.xlu1 %v25_v6 }
   0xb   :  { %v43_v14 = vrot.slane %v16_v4, %v42_v13  ;;  %p115_p3 = por %p114_p2, %p113_p1 }
   0xc   :  { %v59_v30 = vld [vmem:[#allocation2] sm:$0x1] }
   0xd   :  { %p116_p4 = pnand %p115_p3, %p109_p0 }
  0x74   :  { %v32_v7 = vpop.permute.xlu0 %31 }
  0x75   :  { %v34_v8 = vsub.f32 %v29_v0, %v32_v7 }
  0x77   :  { %37 = vperm.xlu0 %107, %v34_v8  }
  0x93   :  { %v27_v10 = vpop.xlane.xlu1 %26 }
  0x94   :  { %28 = vst.msk [vmem:[#allocation3] sm:$0x1] %vm21_vm1, %v27_v10 }
  0x9b   :  { %v75_v21 = vld [vmem:[#allocation3] sm:$0x1] }
  0x9c   :  { %v76_v22 = vmul.f32 0.125, %v75_v21 }
  0x9e   :  { %v81_v23 = vrot.slane %v76_v22, %v42_v13 }
  0xf2   :  { %v38_v15 = vpop.permute.xlu0 %37 }
  0xf3   :  { %v44_v16 = vsub.f32 %v38_v15, %v43_v14 }
  0xf5   :  { %v45_v17 = vand.u32 2147483647, %v44_v16 }
  0xf7   :  { %v101_v18 = vadd.f32 -0.2, %v45_v17 }
  0xf9   :  { %v47_v19 = vmax.f32 %v101_v18, 0.0 }
  0xfb   :  { %v49_v20 = vsel %vm48_vm2, %v47_v19, 0.0 }
  0xfc   :  { %50 = vadd.xlane.f32.xlu1 %v49_v20 }
 0x10d   :  { %82 = vrot.lane.b32.xlu1 %v81_v23, %s133_s0 }
 0x185   :  { %v51_v24 = vpop.xlane.xlu1 %50 }
 0x186   :  { %v60_v25 = vrot.slane %v51_v24, 4 }
 0x188   :  { %v61_v26 = vadd.f32 %v60_v25, %v51_v24 }
 0x189   :  { %v83_v34 = vpop.permute.xlu1 %82 }
 0x18a   :  { %v62_v27 = vrot.slane %v61_v26, 2 }
 0x18c   :  { %v63_v28 = vadd.f32 %v62_v27, %v61_v26 }
 0x18e   :  { %v64_v29 = vrot.slane %v63_v28, 1 }
 0x190   :  { %v65_v31 = vadd.f32 %v64_v29, %v63_v28 }
 0x192   :  { %v66_v32 = vadd.f32 %v65_v31, %v59_v30 }
 0x194   :  { %68 = vst.msk [vmem:[#allocation2] sm:$0x1] %vm21_vm1, %v66_v32 }
 0x19b   :  { %v72_v33 = vld [vmem:[#allocation2] sm:$0x1] }
 0x19c   :  { %v73_v35 = vmul.f32 0.015625, %v72_v33 }
 0x19e   :  { %74 = vst.msk [vmem:[#allocation4] sm:$0x1] %vm21_vm1, %v73_v35 }
 0x19f   :  { %86 = vst.msk [vmem:[#allocation4] sm:$0x1] %vm85_vm3, %v83_v34 }
 0x1a0   :  { %119 = shalt.err (!%p116_p4)
}
 0x1a1   :  { %96 = dma.vmem_to_hbm [thread:$0]  %s94_s14, 16, %s165_s2, [#allocation5]  }
 0x1a2   :  { %128 = dma.done.wait [#allocation5], 16  }
 0x1a3   :  { %129 = vsyncadd [#allocation5], 4294967280 }
 0x1a4   :  { %100 = vsyncpa [#allocation5], 1 }

</bundles_post_ra>
